<compile_context>
chip_gen: v7x
topology: tpu7x:2x2x1
jax: 0.10.0
libtpu: 0.0.40
codegen_flags: <defaults>
</compile_context>

<pallas_src>
import jax
import jax.numpy as jnp
from jax.experimental import pallas as pl
from jax.experimental.pallas import tpu as pltpu


def _round_up(a, b):
    return ((a + b - 1) // b) * b


def _vmem_limit_bytes():
    """Generation-aware VMEM limit: physical capacity minus headroom for compiler
    internal scratch (~48 MiB on v7x, ~112 MiB on v5e/v6e)."""
    try:
        cap = int(pltpu.get_tpu_info().vmem_capacity_bytes)
    except Exception:
        cap = 64 * 1024 * 1024  # conservative: assume v7x (smallest per-TC VMEM)
    return int(max(32 * 1024 * 1024, cap - 16 * 1024 * 1024))


def _mlp_kernel(x_ref, w1v_ref, w1g_ref, b1v_ref, b1g_ref, w2_ref, b2_ref,
                o_ref, acc_ref):
    hc_idx = pl.program_id(1)

    @pl.when(hc_idx == 0)
    def _():
        acc_ref[...] = jnp.zeros_like(acc_ref)

    # Cast the activation tile to the weight compute dtype (no-op if already bf16).
    x = x_ref[...].astype(w1v_ref.dtype)

    # fc1, split into value / gate halves (torch.chunk order: first half = value).
    val = jnp.dot(x, w1v_ref[...], preferred_element_type=jnp.float32) + b1v_ref[...]
    gate = jnp.dot(x, w1g_ref[...], preferred_element_type=jnp.float32) + b1g_ref[...]

    # SwiGLU in f32: silu(gate) * val.
    act = val * (gate * jax.nn.sigmoid(gate))

    # fc2 partial product for this hidden chunk, accumulated in f32.
    acc_ref[...] += jnp.dot(act.astype(w2_ref.dtype), w2_ref[...],
                            preferred_element_type=jnp.float32)

    @pl.when(hc_idx == pl.num_programs(1) - 1)
    def _():
        o_ref[...] = (acc_ref[...] + b2_ref[...]).astype(o_ref.dtype)


def mlp_pallas(x, w1, b1, w2, b2, *, tm=512, compute_dtype=jnp.bfloat16):
    """SwiGLU MLP forward.

    x : (B, S, D_in)       (f32 or bf16; output dtype follows x)
    w1: (D_in, 2*H)        (transposed vs. PyTorch fc1.weight)
    b1: (2*H,)
    w2: (H, D_out)         (transposed vs. PyTorch fc2.weight)
    b2: (D_out,)
    """
    B, S, D_in = x.shape
    H = w1.shape[1] // 2
    D_out = w2.shape[1]
    M = B * S
    x2d = x.reshape(M, D_in)  # no padding: ragged last row tile is masked by Pallas

    # ---- row-tile selection --------------------------------------------------
    tm_eff = min(tm, M)
    if tm_eff == M and M >= 512 and M % 16 == 0:
        tm_eff = M // 2  # grid_m >= 2 so the "parallel" row axis feeds both TCs (v7x)
    if tm_eff < M:
        tm_eff = max(8, (tm_eff // 8) * 8)  # (8,128) sublane rule for non-full blocks
    grid_m = pl.cdiv(M, tm_eff)

    # ---- lane-dense output & hidden-dim chunking plan -------------------------
    D_out_pad = _round_up(D_out, 128)
    H_pad = _round_up(H, 128)

    x_bytes = jnp.dtype(x.dtype).itemsize
    w_bytes = jnp.dtype(compute_dtype).itemsize
    vmem_limit = _vmem_limit_bytes()
    budget = vmem_limit - (8 << 20)                        # headroom for compiler scratch
    stream = 2 * tm_eff * (D_in + D_out_pad) * x_bytes     # double-buffered x / out tiles

    def _fits(hc_cand):
        # Conservative: assume 2 VMEM buffers per weight operand.
        weights = 2 * (2 * D_in * hc_cand + hc_cand * D_out_pad) * w_bytes
        temps = 3 * tm_eff * hc_cand * 4 + tm_eff * D_out_pad * 4  # f32 val/gate/act + acc
        return weights + temps + stream <= budget

    if _fits(H_pad):
        hc = H_pad                      # everything resident; grid_h == 1
    else:
        hc = 256                        # chunk the hidden dim (multiple of 256, MXU-dense K)
        cand = 512
        while cand < H_pad and _fits(cand):
            hc = cand
            cand += 256
    H_full = _round_up(H, hc)
    grid_h = H_full // hc

    # ---- one-time weight prep (hoist / cache in a real model) -----------------
    w1v = w1[:, :H]
    w1g = w1[:, H:]
    b1v = b1[:H]
    b1g = b1[H:]
    w2p = w2
    if H_full != H:
        hp = H_full - H
        w1v = jnp.pad(w1v, ((0, 0), (0, hp)))
        w1g = jnp.pad(w1g, ((0, 0), (0, hp)))
        b1v = jnp.pad(b1v, (0, hp))
        b1g = jnp.pad(b1g, (0, hp))
        w2p = jnp.pad(w2p, ((0, hp), (0, 0)))
    b2p = b2
    if D_out_pad != D_out:
        w2p = jnp.pad(w2p, ((0, 0), (0, D_out_pad - D_out)))
        b2p = jnp.pad(b2p, (0, D_out_pad - D_out))

    w1v = w1v.astype(compute_dtype)
    w1g = w1g.astype(compute_dtype)
    w2p = w2p.astype(compute_dtype)
    b1v = b1v.reshape(1, H_full).astype(jnp.float32)
    b1g = b1g.reshape(1, H_full).astype(jnp.float32)
    b2p = b2p.reshape(1, D_out_pad).astype(jnp.float32)

    resident = (grid_h == 1)

    def _call(single_buffer_residents):
        def wspec(shape, index_map):
            if single_buffer_residents:
                # Resident weights are fetched once; a single VMEM buffer halves the
                # dominant VMEM consumer (matters on v7x's 64 MiB).
                return pl.BlockSpec(shape, index_map, pipeline_mode=pl.Buffered(1))
            return pl.BlockSpec(shape, index_map)

        grid_spec = pltpu.PrefetchScalarGridSpec(
            num_scalar_prefetch=0,
            grid=(grid_m, grid_h),
            in_specs=[
                pl.BlockSpec((tm_eff, D_in), lambda i, h: (i, 0)),   # x row tile (streamed)
                wspec((D_in, hc), lambda i, h: (0, h)),              # W1 value half
                wspec((D_in, hc), lambda i, h: (0, h)),              # W1 gate half
                wspec((1, hc), lambda i, h: (0, h)),                 # b1 value half
                wspec((1, hc), lambda i, h: (0, h)),                 # b1 gate half
                wspec((hc, D_out_pad), lambda i, h: (h, 0)),         # W2
                wspec((1, D_out_pad), lambda i, h: (0, 0)),          # b2
            ],
            out_specs=pl.BlockSpec((tm_eff, D_out_pad), lambda i, h: (i, 0)),
            scratch_shapes=[pltpu.VMEM((tm_eff, D_out_pad), jnp.float32)],
        )
        return pl.pallas_call(
            _mlp_kernel,
            out_shape=jax.ShapeDtypeStruct((M, D_out_pad), x.dtype),
            grid_spec=grid_spec,
            compiler_params=pltpu.CompilerParams(
                dimension_semantics=("parallel", "arbitrary"),
                vmem_limit_bytes=vmem_limit,
            ),
        )(x2d, w1v, w1g, b1v, b1g, w2p, b2p)

    if resident:
        try:
            out2d = _call(True)
        except Exception:
            # Fallback if single-buffered pipeline_mode is unsupported in this jax build.
            out2d = _call(False)
    else:
        out2d = _call(False)

    return out2d[:, :D_out].reshape(B, S, D_out)


def mlp_reference(x, w1, b1, w2, b2):
    h = jnp.einsum("bsd,dh->bsh", x, w1) + b1
    H = w2.shape[0]
    val, gate = h[..., :H], h[..., H:]
    a = val * (gate * jax.nn.sigmoid(gate))
    return jnp.einsum("bsh,hd->bsd", a, w2) + b2


if __name__ == "__main__":
    # config: in_dims=32, mlp_ratio=4 -> hidden=128, hidden_act='swiglu', out_dims=in_dims
    # NOTE: at this tiny size per-call overhead dominates; in a real model this MLP should
    # be fused into a larger kernel (see header).  This config is a correctness check.
    B, S, D_in = 2, 8, 32
    mlp_ratio = 4
    H = int(D_in * mlp_ratio)        # 128
    D_out = D_in

    key = jax.random.PRNGKey(0)
    kx, kw1, kb1, kw2, kb2 = jax.random.split(key, 5)
    x = jax.random.normal(kx, (B, S, D_in), dtype=jnp.float32)
    w1 = jax.random.normal(kw1, (D_in, 2 * H), dtype=jnp.float32) * 0.05
    b1 = jax.random.normal(kb1, (2 * H,), dtype=jnp.float32) * 0.05
    w2 = jax.random.normal(kw2, (H, D_out), dtype=jnp.float32) * 0.05
    b2 = jax.random.normal(kb2, (D_out,), dtype=jnp.float32) * 0.05

    out = mlp_pallas(x, w1, b1, w2, b2)
    out = jax.block_until_ready(out)

    ref = mlp_reference(x, w1, b1, w2, b2)
    assert out.shape == (B, S, D_out)
    # bf16 weights + f32 accumulation vs. pure-f32 reference: bf16-level tolerance.
    assert jnp.allclose(out, ref, atol=2e-2, rtol=2e-2), "mismatch vs reference"

    print("KERNEL_OK")
</pallas_src>

<mosaic_0001>
module attributes {stable_mosaic.version = 11 : i64} {
  func.func @_mlp_kernel(%arg0: i32, %arg1: i32, %arg2: memref<16x32xf32, #tpu.memory_space<vmem>>, %arg3: memref<32x128xbf16, #tpu.memory_space<vmem>>, %arg4: memref<32x128xbf16, #tpu.memory_space<vmem>>, %arg5: memref<1x128xf32, #tpu.memory_space<vmem>>, %arg6: memref<1x128xf32, #tpu.memory_space<vmem>>, %arg7: memref<128x128xbf16, #tpu.memory_space<vmem>>, %arg8: memref<1x128xf32, #tpu.memory_space<vmem>>, %arg9: memref<16x128xf32, #tpu.memory_space<vmem>>, %arg10: memref<16x128xf32, #tpu.memory_space<vmem>>) attributes {dimension_semantics = [#tpu.dimension_semantics<parallel>, #tpu.dimension_semantics<arbitrary>], iteration_bounds = array<i64: 1, 1>, scalar_prefetch = 0 : i64, scratch_operands = 1 : i64, tpu.core_type = #tpu.core_type<tc>, window_params = [{transform_indices = @transform_0, window_bounds = array<i64: 16, 32>}, {pipeline_mode = #tpu.pipeline_mode<synchronous>, transform_indices = @transform_1, window_bounds = array<i64: 32, 128>}, {pipeline_mode = #tpu.pipeline_mode<synchronous>, transform_indices = @transform_2, window_bounds = array<i64: 32, 128>}, {pipeline_mode = #tpu.pipeline_mode<synchronous>, transform_indices = @transform_3, window_bounds = array<i64: 1, 128>}, {pipeline_mode = #tpu.pipeline_mode<synchronous>, transform_indices = @transform_4, window_bounds = array<i64: 1, 128>}, {pipeline_mode = #tpu.pipeline_mode<synchronous>, transform_indices = @transform_5, window_bounds = array<i64: 128, 128>}, {pipeline_mode = #tpu.pipeline_mode<synchronous>, transform_indices = @transform_6, window_bounds = array<i64: 1, 128>}, {transform_indices = @transform_7, window_bounds = array<i64: 16, 128>}]} {
    %c0_i32 = arith.constant 0 : i32
    %0 = arith.cmpi eq, %arg1, %c0_i32 : i32
    %1 = arith.extui %0 : i1 to i32
    %c0_i32_0 = arith.constant 0 : i32
    %2 = arith.cmpi ne, %1, %c0_i32_0 : i32
    scf.if %2 {
      %cst_21 = arith.constant 0.000000e+00 : f32
      %31 = vector.broadcast %cst_21 : f32 to vector<16x128xf32>
      %c0_22 = arith.constant 0 : index
      %c0_23 = arith.constant 0 : index
      %32 = vector.load %arg10[%c0_22, %c0_23] : memref<16x128xf32, #tpu.memory_space<vmem>>, vector<16x128xf32>
      tpu.vector_store %arg10[%c0_22, %c0_23], %31 {strides = array<i32>} : memref<16x128xf32, #tpu.memory_space<vmem>>, vector<16x128xf32>,
    } else {
    }
    %c0 = arith.constant 0 : index
    %c0_1 = arith.constant 0 : index
    %3 = vector.load %arg2[%c0, %c0_1] : memref<16x32xf32, #tpu.memory_space<vmem>>, vector<16x32xf32>
    %4 = arith.truncf %3 : vector<16x32xf32> to vector<16x32xbf16>
    %c0_2 = arith.constant 0 : index
    %c0_3 = arith.constant 0 : index
    %5 = vector.load %arg3[%c0_2, %c0_3] : memref<32x128xbf16, #tpu.memory_space<vmem>>, vector<32x128xbf16>
    %cst = arith.constant dense<0.000000e+00> : vector<16x128xf32>
    %6 = tpu.matmul %4, %5, %cst {dimension_numbers = #tpu.dot_dimension_numbers<[1], [0], [0], [1], [0, 0, 1, 1], [], []>} : vector<16x32xbf16>, vector<32x128xbf16>, vector<16x128xf32> -> vector<16x128xf32>
    %c0_4 = arith.constant 0 : index
    %c0_5 = arith.constant 0 : index
    %7 = vector.load %arg5[%c0_4, %c0_5] : memref<1x128xf32, #tpu.memory_space<vmem>>, vector<1x128xf32>
    %8 = vector.broadcast %7 : vector<1x128xf32> to vector<16x128xf32>
    %9 = arith.addf %6, %8 : vector<16x128xf32>
    %c0_6 = arith.constant 0 : index
    %c0_7 = arith.constant 0 : index
    %10 = vector.load %arg4[%c0_6, %c0_7] : memref<32x128xbf16, #tpu.memory_space<vmem>>, vector<32x128xbf16>
    %cst_8 = arith.constant dense<0.000000e+00> : vector<16x128xf32>
    %11 = tpu.matmul %4, %10, %cst_8 {dimension_numbers = #tpu.dot_dimension_numbers<[1], [0], [0], [1], [0, 0, 1, 1], [], []>} : vector<16x32xbf16>, vector<32x128xbf16>, vector<16x128xf32> -> vector<16x128xf32>
    %c0_9 = arith.constant 0 : index
    %c0_10 = arith.constant 0 : index
    %12 = vector.load %arg6[%c0_9, %c0_10] : memref<1x128xf32, #tpu.memory_space<vmem>>, vector<1x128xf32>
    %13 = vector.broadcast %12 : vector<1x128xf32> to vector<16x128xf32>
    %14 = arith.addf %11, %13 : vector<16x128xf32>
    %15 = arith.negf %14 : vector<16x128xf32>
    %16 = math.exp %15 : vector<16x128xf32>
    %cst_11 = arith.constant 1.000000e+00 : f32
    %17 = vector.broadcast %cst_11 : f32 to vector<16x128xf32>
    %18 = arith.addf %17, %16 : vector<16x128xf32>
    %19 = arith.divf %17, %18 : vector<16x128xf32>
    %20 = arith.mulf %14, %19 : vector<16x128xf32>
    %21 = arith.mulf %9, %20 : vector<16x128xf32>
    %c0_12 = arith.constant 0 : index
    %c0_13 = arith.constant 0 : index
    %22 = vector.load %arg10[%c0_12, %c0_13] : memref<16x128xf32, #tpu.memory_space<vmem>>, vector<16x128xf32>
    %23 = arith.truncf %21 : vector<16x128xf32> to vector<16x128xbf16>
    %c0_14 = arith.constant 0 : index
    %c0_15 = arith.constant 0 : index
    %24 = vector.load %arg7[%c0_14, %c0_15] : memref<128x128xbf16, #tpu.memory_space<vmem>>, vector<128x128xbf16>
    %cst_16 = arith.constant dense<0.000000e+00> : vector<16x128xf32>
    %25 = tpu.matmul %23, %24, %cst_16 {dimension_numbers = #tpu.dot_dimension_numbers<[1], [0], [0], [1], [0, 0, 1, 1], [], []>} : vector<16x128xbf16>, vector<128x128xbf16>, vector<16x128xf32> -> vector<16x128xf32>
    %26 = arith.addf %22, %25 : vector<16x128xf32>
    %c0_17 = arith.constant 0 : index
    %c0_18 = arith.constant 0 : index
    %27 = vector.load %arg10[%c0_17, %c0_18] : memref<16x128xf32, #tpu.memory_space<vmem>>, vector<16x128xf32>
    tpu.vector_store %arg10[%c0_17, %c0_18], %26 {strides = array<i32>} : memref<16x128xf32, #tpu.memory_space<vmem>>, vector<16x128xf32>,
    %c0_i32_19 = arith.constant 0 : i32
    %28 = arith.cmpi eq, %arg1, %c0_i32_19 : i32
    %29 = arith.extui %28 : i1 to i32
    %c0_i32_20 = arith.constant 0 : i32
    %30 = arith.cmpi ne, %29, %c0_i32_20 : i32
    scf.if %30 {
      %c0_21 = arith.constant 0 : index
      %c0_22 = arith.constant 0 : index
      %31 = vector.load %arg10[%c0_21, %c0_22] : memref<16x128xf32, #tpu.memory_space<vmem>>, vector<16x128xf32>
      %c0_23 = arith.constant 0 : index
      %c0_24 = arith.constant 0 : index
      %32 = vector.load %arg8[%c0_23, %c0_24] : memref<1x128xf32, #tpu.memory_space<vmem>>, vector<1x128xf32>
      %33 = vector.broadcast %32 : vector<1x128xf32> to vector<16x128xf32>
      %34 = arith.addf %31, %33 : vector<16x128xf32>
      %c0_25 = arith.constant 0 : index
      %c0_26 = arith.constant 0 : index
      %35 = vector.load %arg9[%c0_25, %c0_26] : memref<16x128xf32, #tpu.memory_space<vmem>>, vector<16x128xf32>
      tpu.vector_store %arg9[%c0_25, %c0_26], %34 {strides = array<i32>} : memref<16x128xf32, #tpu.memory_space<vmem>>, vector<16x128xf32>,
    } else {
    }
    return
  }
  func.func @transform_0(%arg0: i32, %arg1: i32) -> (i32, i32) {
    %c0_i32 = arith.constant 0 : i32
    %c0_i32_0 = arith.constant 0 : i32
    return %arg0, %c0_i32 : i32, i32
  }
  func.func @transform_1(%arg0: i32, %arg1: i32) -> (i32, i32) {
    %c0_i32 = arith.constant 0 : i32
    %c0_i32_0 = arith.constant 0 : i32
    return %c0_i32, %arg1 : i32, i32
  }
  func.func @transform_2(%arg0: i32, %arg1: i32) -> (i32, i32) {
    %c0_i32 = arith.constant 0 : i32
    %c0_i32_0 = arith.constant 0 : i32
    return %c0_i32, %arg1 : i32, i32
  }
  func.func @transform_3(%arg0: i32, %arg1: i32) -> (i32, i32) {
    %c0_i32 = arith.constant 0 : i32
    %c0_i32_0 = arith.constant 0 : i32
    return %c0_i32, %arg1 : i32, i32
  }
  func.func @transform_4(%arg0: i32, %arg1: i32) -> (i32, i32) {
    %c0_i32 = arith.constant 0 : i32
    %c0_i32_0 = arith.constant 0 : i32
    return %c0_i32, %arg1 : i32, i32
  }
  func.func @transform_5(%arg0: i32, %arg1: i32) -> (i32, i32) {
    %c0_i32 = arith.constant 0 : i32
    %c0_i32_0 = arith.constant 0 : i32
    return %arg1, %c0_i32 : i32, i32
  }
  func.func @transform_6(%arg0: i32, %arg1: i32) -> (i32, i32) {
    %c0_i32 = arith.constant 0 : i32
    %c0_i32_0 = arith.constant 0 : i32
    %c0_i32_1 = arith.constant 0 : i32
    return %c0_i32, %c0_i32_0 : i32, i32
  }
  func.func @transform_7(%arg0: i32, %arg1: i32) -> (i32, i32) {
    %c0_i32 = arith.constant 0 : i32
    %c0_i32_0 = arith.constant 0 : i32
    return %arg0, %c0_i32 : i32, i32
  }
}

module attributes {stable_mosaic.version = 11 : i64} {
  func.func @_mlp_kernel(%arg0: i32, %arg1: i32, %arg2: memref<16x32xf32, #tpu.memory_space<vmem>>, %arg3: memref<32x128xbf16, #tpu.memory_space<vmem>>, %arg4: memref<32x128xbf16, #tpu.memory_space<vmem>>, %arg5: memref<1x128xf32, #tpu.memory_space<vmem>>, %arg6: memref<1x128xf32, #tpu.memory_space<vmem>>, %arg7: memref<128x128xbf16, #tpu.memory_space<vmem>>, %arg8: memref<1x128xf32, #tpu.memory_space<vmem>>, %arg9: memref<16x128xf32, #tpu.memory_space<vmem>>, %arg10: memref<16x128xf32, #tpu.memory_space<vmem>>) attributes {dimension_semantics = [#tpu.dimension_semantics<parallel>, #tpu.dimension_semantics<arbitrary>], iteration_bounds = array<i64: 1, 1>, scalar_prefetch = 0 : i64, scratch_operands = 1 : i64, tpu.core_type = #tpu.core_type<tc>, window_params = [{transform_indices = @transform_0, window_bounds = array<i64: 16, 32>}, {transform_indices = @transform_1, window_bounds = array<i64: 32, 128>}, {transform_indices = @transform_2, window_bounds = array<i64: 32, 128>}, {transform_indices = @transform_3, window_bounds = array<i64: 1, 128>}, {transform_indices = @transform_4, window_bounds = array<i64: 1, 128>}, {transform_indices = @transform_5, window_bounds = array<i64: 128, 128>}, {pipeline_mode = #tpu.pipeline_mode<synchronous>, transform_indices = @transform_6, window_bounds = array<i64: 1, 128>}, {transform_indices = @transform_7, window_bounds = array<i64: 16, 128>}]} {
    %c0_i32 = arith.constant 0 : i32
    %0 = arith.cmpi eq, %arg1, %c0_i32 : i32
    %1 = arith.extui %0 : i1 to i32
    %c0_i32_0 = arith.constant 0 : i32
    %2 = arith.cmpi ne, %1, %c0_i32_0 : i32
    scf.if %2 {
      %cst_21 = arith.constant 0.000000e+00 : f32
      %31 = vector.broadcast %cst_21 : f32 to vector<16x128xf32>
      %c0_22 = arith.constant 0 : index
      %c0_23 = arith.constant 0 : index
      %32 = vector.load %arg10[%c0_22, %c0_23] : memref<16x128xf32, #tpu.memory_space<vmem>>, vector<16x128xf32>
      tpu.vector_store %arg10[%c0_22, %c0_23], %31 {strides = array<i32>} : memref<16x128xf32, #tpu.memory_space<vmem>>, vector<16x128xf32>,
    } else {
    }
    %c0 = arith.constant 0 : index
    %c0_1 = arith.constant 0 : index
    %3 = vector.load %arg2[%c0, %c0_1] : memref<16x32xf32, #tpu.memory_space<vmem>>, vector<16x32xf32>
    %4 = arith.truncf %3 : vector<16x32xf32> to vector<16x32xbf16>
    %c0_2 = arith.constant 0 : index
    %c0_3 = arith.constant 0 : index
    %5 = vector.load %arg3[%c0_2, %c0_3] : memref<32x128xbf16, #tpu.memory_space<vmem>>, vector<32x128xbf16>
    %cst = arith.constant dense<0.000000e+00> : vector<16x128xf32>
    %6 = tpu.matmul %4, %5, %cst {dimension_numbers = #tpu.dot_dimension_numbers<[1], [0], [0], [1], [0, 0, 1, 1], [], []>} : vector<16x32xbf16>, vector<32x128xbf16>, vector<16x128xf32> -> vector<16x128xf32>
    %c0_4 = arith.constant 0 : index
    %c0_5 = arith.constant 0 : index
    %7 = vector.load %arg5[%c0_4, %c0_5] : memref<1x128xf32, #tpu.memory_space<vmem>>, vector<1x128xf32>
    %8 = vector.broadcast %7 : vector<1x128xf32> to vector<16x128xf32>
    %9 = arith.addf %6, %8 : vector<16x128xf32>
    %c0_6 = arith.constant 0 : index
    %c0_7 = arith.constant 0 : index
    %10 = vector.load %arg4[%c0_6, %c0_7] : memref<32x128xbf16, #tpu.memory_space<vmem>>, vector<32x128xbf16>
    %cst_8 = arith.constant dense<0.000000e+00> : vector<16x128xf32>
    %11 = tpu.matmul %4, %10, %cst_8 {dimension_numbers = #tpu.dot_dimension_numbers<[1], [0], [0], [1], [0, 0, 1, 1], [], []>} : vector<16x32xbf16>, vector<32x128xbf16>, vector<16x128xf32> -> vector<16x128xf32>
    %c0_9 = arith.constant 0 : index
    %c0_10 = arith.constant 0 : index
    %12 = vector.load %arg6[%c0_9, %c0_10] : memref<1x128xf32, #tpu.memory_space<vmem>>, vector<1x128xf32>
    %13 = vector.broadcast %12 : vector<1x128xf32> to vector<16x128xf32>
    %14 = arith.addf %11, %13 : vector<16x128xf32>
    %15 = arith.negf %14 : vector<16x128xf32>
    %16 = math.exp %15 : vector<16x128xf32>
    %cst_11 = arith.constant 1.000000e+00 : f32
    %17 = vector.broadcast %cst_11 : f32 to vector<16x128xf32>
    %18 = arith.addf %17, %16 : vector<16x128xf32>
    %19 = arith.divf %17, %18 : vector<16x128xf32>
    %20 = arith.mulf %14, %19 : vector<16x128xf32>
    %21 = arith.mulf %9, %20 : vector<16x128xf32>
    %c0_12 = arith.constant 0 : index
    %c0_13 = arith.constant 0 : index
    %22 = vector.load %arg10[%c0_12, %c0_13] : memref<16x128xf32, #tpu.memory_space<vmem>>, vector<16x128xf32>
    %23 = arith.truncf %21 : vector<16x128xf32> to vector<16x128xbf16>
    %c0_14 = arith.constant 0 : index
    %c0_15 = arith.constant 0 : index
    %24 = vector.load %arg7[%c0_14, %c0_15] : memref<128x128xbf16, #tpu.memory_space<vmem>>, vector<128x128xbf16>
    %cst_16 = arith.constant dense<0.000000e+00> : vector<16x128xf32>
    %25 = tpu.matmul %23, %24, %cst_16 {dimension_numbers = #tpu.dot_dimension_numbers<[1], [0], [0], [1], [0, 0, 1, 1], [], []>} : vector<16x128xbf16>, vector<128x128xbf16>, vector<16x128xf32> -> vector<16x128xf32>
    %26 = arith.addf %22, %25 : vector<16x128xf32>
    %c0_17 = arith.constant 0 : index
    %c0_18 = arith.constant 0 : index
    %27 = vector.load %arg10[%c0_17, %c0_18] : memref<16x128xf32, #tpu.memory_space<vmem>>, vector<16x128xf32>
    tpu.vector_store %arg10[%c0_17, %c0_18], %26 {strides = array<i32>} : memref<16x128xf32, #tpu.memory_space<vmem>>, vector<16x128xf32>,
    %c0_i32_19 = arith.constant 0 : i32
    %28 = arith.cmpi eq, %arg1, %c0_i32_19 : i32
    %29 = arith.extui %28 : i1 to i32
    %c0_i32_20 = arith.constant 0 : i32
    %30 = arith.cmpi ne, %29, %c0_i32_20 : i32
    scf.if %30 {
      %c0_21 = arith.constant 0 : index
      %c0_22 = arith.constant 0 : index
      %31 = vector.load %arg10[%c0_21, %c0_22] : memref<16x128xf32, #tpu.memory_space<vmem>>, vector<16x128xf32>
      %c0_23 = arith.constant 0 : index
      %c0_24 = arith.constant 0 : index
      %32 = vector.load %arg8[%c0_23, %c0_24] : memref<1x128xf32, #tpu.memory_space<vmem>>, vector<1x128xf32>
      %33 = vector.broadcast %32 : vector<1x128xf32> to vector<16x128xf32>
      %34 = arith.addf %31, %33 : vector<16x128xf32>
      %c0_25 = arith.constant 0 : index
      %c0_26 = arith.constant 0 : index
      %35 = vector.load %arg9[%c0_25, %c0_26] : memref<16x128xf32, #tpu.memory_space<vmem>>, vector<16x128xf32>
      tpu.vector_store %arg9[%c0_25, %c0_26], %34 {strides = array<i32>} : memref<16x128xf32, #tpu.memory_space<vmem>>, vector<16x128xf32>,
    } else {
    }
    return
  }
  func.func @transform_0(%arg0: i32, %arg1: i32) -> (i32, i32) {
    %c0_i32 = arith.constant 0 : i32
    %c0_i32_0 = arith.constant 0 : i32
    return %arg0, %c0_i32 : i32, i32
  }
  func.func @transform_1(%arg0: i32, %arg1: i32) -> (i32, i32) {
    %c0_i32 = arith.constant 0 : i32
    %c0_i32_0 = arith.constant 0 : i32
    return %c0_i32, %arg1 : i32, i32
  }
  func.func @transform_2(%arg0: i32, %arg1: i32) -> (i32, i32) {
    %c0_i32 = arith.constant 0 : i32
    %c0_i32_0 = arith.constant 0 : i32
    return %c0_i32, %arg1 : i32, i32
  }
  func.func @transform_3(%arg0: i32, %arg1: i32) -> (i32, i32) {
    %c0_i32 = arith.constant 0 : i32
    %c0_i32_0 = arith.constant 0 : i32
    return %c0_i32, %arg1 : i32, i32
  }
  func.func @transform_4(%arg0: i32, %arg1: i32) -> (i32, i32) {
    %c0_i32 = arith.constant 0 : i32
    %c0_i32_0 = arith.constant 0 : i32
    return %c0_i32, %arg1 : i32, i32
  }
  func.func @transform_5(%arg0: i32, %arg1: i32) -> (i32, i32) {
    %c0_i32 = arith.constant 0 : i32
    %c0_i32_0 = arith.constant 0 : i32
    return %arg1, %c0_i32 : i32, i32
  }
  func.func @transform_6(%arg0: i32, %arg1: i32) -> (i32, i32) {
    %c0_i32 = arith.constant 0 : i32
    %c0_i32_0 = arith.constant 0 : i32
    %c0_i32_1 = arith.constant 0 : i32
    return %c0_i32, %c0_i32_0 : i32, i32
  }
  func.func @transform_7(%arg0: i32, %arg1: i32) -> (i32, i32) {
    %c0_i32 = arith.constant 0 : i32
    %c0_i32_0 = arith.constant 0 : i32
    return %arg0, %c0_i32 : i32, i32
  }
}

</mosaic_0001>

<bundles_post_ra>
// kernel: tpu_custom_call.1
= control target key start
LH: loop header
LB: loop body
LE: loop exit
PB: predicated region body
PF: predicated region fallthrough
CT: control target
= control target key end

     0   :  { %12 = vsyncpa [#allocation4], 0  ;;  %s751_s0 = inlined_call_operand.hbm [shape: f32[16,32], index: 0, kind: input, shape index: {}]   ;;  %s752_s1 = inlined_call_operand.hbm [shape: bf16[32,128], index: 1, kind: input, shape index: {}]   ;;  %s753_s2 = inlined_call_operand.hbm [shape: bf16[32,128], index: 2, kind: input, shape index: {}]   ;;  %s754_s3 = inlined_call_operand.vmem [shape: f32[1,128], index: 3, kind: input, shape index: {}]   ;;  %s755_s4 = inlined_call_operand.vmem [shape: f32[1,128], index: 4, kind: input, shape index: {}]   ;;  %s756_s5 = inlined_call_operand.hbm [shape: bf16[128,128], index: 5, kind: input, shape index: {}]   ;;  %s757_s6 = inlined_call_operand.vmem [shape: f32[1,128], index: 6, kind: input, shape index: {}]   ;;  %s758_s7 = inlined_call_operand.hbm [shape: f32[16,128], index: 7, kind: output, shape index: {}]  }
   0x1   :  { %13 = vsyncpa [#allocation7], 0 }
   0x2   :  { %14 = vsyncpa [#allocation10], 0 }
   0x3   :  { %15 = vsyncpa [#allocation5], 0  ;;  %s606_s24 = smov [#allocation6]   ;;  %s488_s28 = scalar_lea.hbm %s752_s1, 256 }
   0x4   :  { %s33_s25 = sshll.u32 %s606_s24, 4  ;;  %p489_p0 = scmp.ne.s32.totalorder %s752_s1, %s488_s28  ;;  %s34_s25 = int_to_ptr.vmem [resolvable:$true] %s33_s25 }
   0x5   :  { %p492_p1 = scmp.lt.u32.totalorder %s488_s28, %s752_s1 }
   0x7   :  { %p494_p2 = pnand %p492_p1, %p489_p0 }
   0x9   :  { %497 = shalt.err (!%p494_p2)
}
   0xa   :  { %s498_s10 = scalar_lea.vmem %s34_s25, 256  ;;  %p503_p4 = scmp.lt.s32.totalorder %s34_s25, %s34_s25 }
   0xb   :  { %p499_p3 = scmp.ne.s32.totalorder %s34_s25, %s498_s10  ;;  %p504_p5 = scmp.lt.s32.totalorder %s498_s10, %s498_s10 }
   0xd   :  { %p505_p6 = por %p504_p5, %p503_p4 }
   0xf   :  { %p506_p7 = pnand %p505_p6, %p499_p3 }
  0x11   :  { %509 = shalt.err (!%p506_p7)
}
  0x12   :  { %s607_s11 = smov 64   ;;  %s608_s12 = smov 4  }
  0x13   :  { %39 = dma.hbm_to_vmem [thread:$0]  %s752_s1, 256, %s34_s25, [#allocation7], %s607_s11, %s607_s11, %s608_s12  }
  0x14   :  { %s609_s15 = smov [#allocation3]   ;;  %s510_s19 = scalar_lea.hbm %s751_s0, 256 }
  0x15   :  { %s21_s16 = sshll.u32 %s609_s15, 4  ;;  %p511_p8 = scmp.ne.s32.totalorder %s751_s0, %s510_s19  ;;  %s22_s16 = int_to_ptr.vmem [resolvable:$true] %s21_s16 }
  0x16   :  { %p514_p9 = scmp.lt.u32.totalorder %s510_s19, %s751_s0 }
  0x18   :  { %p516_p10 = pnand %p514_p9, %p511_p8 }
  0x1a   :  { %519 = shalt.err (!%p516_p10)
}
  0x1b   :  { %s520_s24 = scalar_lea.vmem %s22_s16, 256  ;;  %p525_p12 = scmp.lt.s32.totalorder %s22_s16, %s22_s16 }
  0x1c   :  { %p521_p11 = scmp.ne.s32.totalorder %s22_s16, %s520_s24  ;;  %p526_p13 = scmp.lt.s32.totalorder %s520_s24, %s520_s24 }
  0x1e   :  { %p527_p0 = por %p526_p13, %p525_p12 }
  0x20   :  { %p528_p1 = pnand %p527_p0, %p521_p11 }
  0x22   :  { %531 = shalt.err (!%p528_p1)
}
  0x23   :  { %s610_s1 = smov 128   ;;  %s611_s25 = smov 8  }
  0x24   :  { %27 = dma.hbm_to_vmem [thread:$0]  %s751_s0, 256, %s22_s16, [#allocation4], %s610_s1, %s610_s1, %s611_s25  }
  0x25   :  { %s612_s28 = smov [#allocation8]   ;;  %s613_s30 = smov [#allocation9]  }
  0x26   :  { %s45_s29 = sshll.u32 %s612_s28, 4  ;;  %s61_s8 = sshll.u32 %s613_s30, 4  ;;  %s46_s29 = int_to_ptr.vmem [resolvable:$true] %s45_s29  ;;  %s687_s8 = int_to_ptr.vmem [resolvable:$true] %s61_s8 }
  0x27   :  { %s532_s13 = scalar_lea.hbm %s753_s2, 256 }
  0x28   :  { %p533_p2 = scmp.ne.s32.totalorder %s753_s2, %s532_s13  ;;  %p536_p3 = scmp.lt.u32.totalorder %s532_s13, %s753_s2 }
  0x2a   :  { %p538_p4 = pnand %p536_p3, %p533_p2 }
  0x2c   :  { %541 = shalt.err (!%p538_p4)
}
  0x2d   :  { %s542_s0 = scalar_lea.vmem %s46_s29, 256  ;;  %p547_p6 = scmp.lt.s32.totalorder %s46_s29, %s46_s29 }
  0x2e   :  { %p543_p5 = scmp.ne.s32.totalorder %s46_s29, %s542_s0  ;;  %p548_p7 = scmp.lt.s32.totalorder %s542_s0, %s542_s0 }
  0x30   :  { %p549_p8 = por %p548_p7, %p547_p6 }
  0x32   :  { %p550_p9 = pnand %p549_p8, %p543_p5 }
  0x34   :  { %553 = shalt.err (!%p550_p9)
}
  0x35   :  { %51 = dma.hbm_to_vmem [thread:$0]  %s753_s2, 256, %s46_s29, [#allocation7], %s607_s11, %s607_s11, %s608_s12  }
  0x36   :  { %s554_s22 = scalar_lea.hbm %s756_s5, 1024 }
  0x37   :  { %p555_p10 = scmp.ne.s32.totalorder %s756_s5, %s554_s22  ;;  %p558_p11 = scmp.lt.u32.totalorder %s554_s22, %s756_s5 }
  0x39   :  { %p560_p12 = pnand %p558_p11, %p555_p10 }
  0x3b   :  { %563 = shalt.err (!%p560_p12)
}
  0x3c   :  { %s564_s28 = scalar_lea.vmem %s687_s8, 1024  ;;  %p569_p0 = scmp.lt.s32.totalorder %s687_s8, %s687_s8 }
  0x3d   :  { %p565_p13 = scmp.ne.s32.totalorder %s687_s8, %s564_s28  ;;  %p570_p1 = scmp.lt.s32.totalorder %s564_s28, %s564_s28 }
  0x3f   :  { %p571_p2 = por %p570_p1, %p569_p0 }
  0x41   :  { %p572_p3 = pnand %p571_p2, %p565_p13 }
  0x43   :  { %575 = shalt.err (!%p572_p3)
}
  0x44   :  { %67 = dma.hbm_to_vmem [thread:$0]  %s756_s5, 1024, %s687_s8, [#allocation10], %s607_s11, %s607_s11, %s608_s12  }
  0x45   :  { %598 = dma.done.wait [#allocation4], 256  }
  0x46   :  { %599 = vsyncadd [#allocation4], 4294967040 }
  0x47   :  { %600 = dma.done.wait [#allocation7], 512  }
  0x48   :  { %601 = vsyncadd [#allocation7], 4294966784 }
  0x49   :  { %602 = dma.done.wait [#allocation10], 1024  }
  0x4a   :  { %603 = vsyncadd [#allocation10], 4294966272  ;;  %v614_v0 = vmov 0.0   ;;  %vm615_vm0 = vmmov 0   ;;  %v468_v1 = vld [vmem:[#allocation6] sm:$0xff]   ;;  %v469_v2 = vld [vmem:[#allocation6 + $0x8] sm:$0xff]  }
  0x4b   :  { %421 = vmatprep.subr.bf16.mxu1 %v614_v0  ;;  %425 = vmatprep.mubr.msk.bf16.mxu1 %vm615_vm0, %v614_v0  ;;  %v89_v3 = vld [vmem:[#allocation3] sm:$0xff]  ;;  %v90_v4 = vld [vmem:[#allocation3 + $0x8] sm:$0xff]  ;;  %vm115_vm1 = vcmask 261120   ;;  %v472_v8 = vld [vmem:[#allocation9] sm:$0xff]   ;;  %s616_s9 = smov [#allocation11]  }
  0x4c   :  { %437 = vmatprep.subr.bf16.mxu0 %v614_v0  ;;  %453 = vmatprep.mubr.msk.bf16.mxu0 %vm615_vm0, %v614_v0  ;;  %v470_v5 = vld [vmem:[#allocation8] sm:$0xff]   ;;  %v91_v6 = vpack.c.bf16 %v90_v4, %v89_v3  ;;  %v471_v7 = vld [vmem:[#allocation8 + $0x8] sm:$0xff]   ;;  %v473_v9 = vld [vmem:[#allocation9 + $0x8] sm:$0xff]   ;;  %s373_s10 = sshll.u32 %s616_s9, 4  ;;  %s374_s10 = int_to_ptr.vmem [resolvable:$true] %s373_s10 }
  0x4d   :  { %422 = vmatpush3.bf16.msra.mxu1 %v468_v1  ;;  %438 = vmatpush3.bf16.msra.mxu0 %v472_v8  ;;  %v474_v10 = vld [vmem:[#allocation9 + $0x10] sm:$0xff]   ;;  %v475_v11 = vld [vmem:[#allocation9 + $0x18] sm:$0xff]   ;;  %v476_v12 = vld [vmem:[#allocation9 + $0x20] sm:$0xff]   ;;  %p581_p5 = scmp.lt.s32.totalorder %s374_s10, %s374_s10 }
  0x4e   :  { %423 = vmatprep.subr.bf16.mxu1 %v614_v0  ;;  %439 = vmatprep.subr.bf16.mxu0 %v614_v0  ;;  %v477_v13 = vld [vmem:[#allocation9 + $0x28] sm:$0xff]   ;;  %v478_v14 = vld [vmem:[#allocation9 + $0x30] sm:$0xff]   ;;  %v479_v15 = vld [vmem:[#allocation9 + $0x38] sm:$0xff]  }
  0x4f   :  { %v391_v20 = vld [vmem:[%s755_s4] ss:$0 sm:$0xff] }
  0x50   :  { %v387_v33 = vld [vmem:[%s754_s3] ss:$0 sm:$0xff]  ;;  %s576_s3 = scalar_lea.vmem %s374_s10, 256 }
  0x51   :  { %424 = vmatpush3.bf16.msra.mxu1 %v469_v2  ;;  %440 = vmatpush3.bf16.msra.mxu0 %v473_v9  ;;  %v405_v43 = vld [vmem:[%s757_s6] ss:$0 sm:$0xff]  ;;  %p577_p4 = scmp.ne.s32.totalorder %s374_s10, %s576_s3  ;;  %p582_p6 = scmp.lt.s32.totalorder %s576_s3, %s576_s3 }
  0x52   :  { %429 = vmatprep.subr.bf16.mxu1 %v614_v0  ;;  %441 = vmatprep.subr.bf16.mxu0 %v614_v0 }
  0x53   :  { %p583_p7 = por %p582_p6, %p581_p5 }
  0x54   :  { %426 = vmatmul.mubr.msk.bf16.vlgmr.msra.gmra.mrb[0].mxu1 %vm115_vm1, %v91_v6 }
  0x55   :  { %430 = vmatpush3.bf16.msra.mxu1 %v470_v5  ;;  %433 = vmatprep.mubr.msk.bf16.mxu1 %vm615_vm0, %v614_v0  ;;  %p584_p8 = pnand %p583_p7, %p577_p4 }
  0x56   :  { %431 = vmatprep.subr.bf16.mxu1 %v614_v0  ;;  %442 = vmatpush3.bf16.msra.mxu0 %v474_v10 }
  0x57   :  { %443 = vmatprep.subr.bf16.mxu0 %v614_v0 }
  0x59   :  { %432 = vmatpush3.bf16.msra.mxu1 %v471_v7 }
  0x5a   :  { %444 = vmatpush3.bf16.msra.mxu0 %v475_v11 }
  0x5b   :  { %445 = vmatprep.subr.bf16.mxu0 %v614_v0 }
  0x5c   :  { %434 = vmatmul.mubr.msk.bf16.vlgmr.msra.gmra.mrb[4].mxu1 %vm115_vm1, %v91_v6 }
  0x5e   :  { %446 = vmatpush3.bf16.msra.mxu0 %v476_v12 }
  0x5f   :  { %447 = vmatprep.subr.bf16.mxu0 %v614_v0 }
  0x62   :  { %448 = vmatpush3.bf16.msra.mxu0 %v477_v13 }
  0x63   :  { %449 = vmatprep.subr.bf16.mxu0 %v614_v0 }
  0x66   :  { %450 = vmatpush3.bf16.msra.mxu0 %v478_v14 }
  0x67   :  { %451 = vmatprep.subr.bf16.mxu0 %v614_v0 }
  0x6a   :  { %452 = vmatpush3.bf16.msra.mxu0 %v479_v15 }
 0x127   :  { %v153_v16 = vpop.f32.mrb[0].mxu1 }
 0x128   :  { %v427_v17 = vpop.f32.mrb[1].mxu1  ;;  %v154_v35 = vadd.f32 %v387_v33, %v153_v16 }
 0x129   :  { %v156_v18 = vpop.f32.mrb[2].mxu1 }
 0x12a   :  { %v428_v19 = vpop.f32.mrb[3].mxu1  ;;  %v157_v38 = vadd.f32 %v387_v33, %v156_v18 }
 0x12f   :  { %v217_v21 = vpop.f32.mrb[4].mxu1 }
 0x130   :  { %v218_v22 = vadd.f32 %v391_v20, %v217_v21  ;;  %v435_v23 = vpop.f32.mrb[5].mxu1 }
 0x131   :  { %v220_v24 = vpop.f32.mrb[6].mxu1 }
 0x132   :  { %v395_v25 = vmul.f32 -1.442695, %v218_v22  ;;  %v221_v26 = vadd.f32 %v391_v20, %v220_v24  ;;  %v436_v27 = vpop.f32.mrb[7].mxu1 }
 0x134   :  { %480 = vpow2.f32 %v395_v25  ;;  %v396_v28 = vmul.f32 -1.442695, %v221_v26 }
 0x136   :  { %482 = vpow2.f32 %v396_v28 }
 0x13e   :  { %v481_v29 = vpop.eup %480 }
 0x13f   :  { %v230_v30 = vadd.f32 1.0, %v481_v29 }
 0x140   :  { %v483_v31 = vpop.eup %482 }
 0x141   :  { %484 = vrcp.f32 %v230_v30  ;;  %v231_v32 = vadd.f32 1.0, %v483_v31 }
 0x143   :  { %486 = vrcp.f32 %v231_v32 }
 0x14b   :  { %v485_v34 = vpop.eup %484 }
 0x14c   :  { %v236_v36 = vmul.f32 %v485_v34, %v218_v22 }
 0x14d   :  { %v487_v37 = vpop.eup %486 }
 0x14e   :  { %v238_v39 = vmul.f32 %v236_v36, %v154_v35  ;;  %v237_v40 = vmul.f32 %v487_v37, %v221_v26 }
 0x150   :  { %v239_v41 = vmul.f32 %v237_v40, %v157_v38 }
 0x152   :  { %v242_v42 = vpack.c.bf16 %v239_v41, %v238_v39 }
 0x154   :  { %454 = vmatmul.mubr.bf16.vlgmr.msra.gmra.mrb[0].mxu0 %v242_v42 }
 0x227   :  { %v341_v44 = vpop.f32.mrb[0].mxu0 }
 0x228   :  { %v364_v45 = vadd.f32 %v405_v43, %v341_v44  ;;  %v455_v46 = vpop.f32.mrb[1].mxu0 }
 0x229   :  { %v344_v47 = vpop.f32.mrb[2].mxu0 }
 0x22a   :  { %366 = vst [vmem:[#allocation11] sm:$0xff] %v364_v45  ;;  %v365_v48 = vadd.f32 %v405_v43, %v344_v47  ;;  %v456_v49 = vpop.f32.mrb[3].mxu0 }
 0x22c   :  { %367 = vst [vmem:[#allocation11 + $0x8] sm:$0xff] %v365_v48 }
 0x22d   :  { %587 = shalt.err (!%p584_p8)
}
 0x22e   :  { %s588_s14 = scalar_lea.hbm %s758_s7, 256 }
 0x22f   :  { %p589_p9 = scmp.ne.s32.totalorder %s758_s7, %s588_s14  ;;  %p592_p10 = scmp.lt.u32.totalorder %s588_s14, %s758_s7 }
 0x231   :  { %p594_p11 = pnand %p592_p10, %p589_p9 }
 0x233   :  { %597 = shalt.err (!%p594_p11)
}
 0x234   :  { %379 = dma.vmem_to_hbm [thread:$0]  %s374_s10, 256, %s758_s7, [#allocation5], %s610_s1, %s610_s1, %s611_s25  }
 0x235   :  { %604 = dma.done.wait [#allocation5], 256  }
 0x236   :  { %605 = vsyncadd [#allocation5], 4294967040 }
 0x237   :  { %383 = vsyncpa [#allocation4], 1 }
 0x238   :  { %384 = vsyncpa [#allocation7], 1 }
 0x239   :  { %385 = vsyncpa [#allocation10], 1 }
 0x23a   :  { %386 = vsyncpa [#allocation5], 1 }

// kernel: tpu_custom_call.1
= control target key start
LH: loop header
LB: loop body
LE: loop exit
PB: predicated region body
PF: predicated region fallthrough
CT: control target
= control target key end

     0   :  { %12 = vsyncpa [#allocation4], 0  ;;  %s751_s0 = inlined_call_operand.hbm [shape: f32[16,32], index: 0, kind: input, shape index: {}]   ;;  %s752_s1 = inlined_call_operand.hbm [shape: bf16[32,128], index: 1, kind: input, shape index: {}]   ;;  %s753_s2 = inlined_call_operand.hbm [shape: bf16[32,128], index: 2, kind: input, shape index: {}]   ;;  %s754_s3 = inlined_call_operand.vmem [shape: f32[1,128], index: 3, kind: input, shape index: {}]   ;;  %s755_s4 = inlined_call_operand.vmem [shape: f32[1,128], index: 4, kind: input, shape index: {}]   ;;  %s756_s5 = inlined_call_operand.hbm [shape: bf16[128,128], index: 5, kind: input, shape index: {}]   ;;  %s757_s6 = inlined_call_operand.vmem [shape: f32[1,128], index: 6, kind: input, shape index: {}]   ;;  %s758_s7 = inlined_call_operand.hbm [shape: f32[16,128], index: 7, kind: output, shape index: {}]  }
   0x1   :  { %13 = vsyncpa [#allocation7], 0 }
   0x2   :  { %14 = vsyncpa [#allocation10], 0 }
   0x3   :  { %15 = vsyncpa [#allocation5], 0  ;;  %s606_s24 = smov [#allocation6]   ;;  %s488_s28 = scalar_lea.hbm %s752_s1, 256 }
   0x4   :  { %s33_s25 = sshll.u32 %s606_s24, 4  ;;  %p489_p0 = scmp.ne.s32.totalorder %s752_s1, %s488_s28  ;;  %s34_s25 = int_to_ptr.vmem [resolvable:$true] %s33_s25 }
   0x5   :  { %p492_p1 = scmp.lt.u32.totalorder %s488_s28, %s752_s1 }
   0x7   :  { %p494_p2 = pnand %p492_p1, %p489_p0 }
   0x9   :  { %497 = shalt.err (!%p494_p2)
}
   0xa   :  { %s498_s10 = scalar_lea.vmem %s34_s25, 256  ;;  %p503_p4 = scmp.lt.s32.totalorder %s34_s25, %s34_s25 }
   0xb   :  { %p499_p3 = scmp.ne.s32.totalorder %s34_s25, %s498_s10  ;;  %p504_p5 = scmp.lt.s32.totalorder %s498_s10, %s498_s10 }
   0xd   :  { %p505_p6 = por %p504_p5, %p503_p4 }
   0xf   :  { %p506_p7 = pnand %p505_p6, %p499_p3 }
  0x11   :  { %509 = shalt.err (!%p506_p7)
}
  0x12   :  { %s607_s11 = smov 64   ;;  %s608_s12 = smov 4  }
  0x13   :  { %39 = dma.hbm_to_vmem [thread:$0]  %s752_s1, 256, %s34_s25, [#allocation7], %s607_s11, %s607_s11, %s608_s12  }
  0x14   :  { %s609_s15 = smov [#allocation3]   ;;  %s510_s19 = scalar_lea.hbm %s751_s0, 256 }
  0x15   :  { %s21_s16 = sshll.u32 %s609_s15, 4  ;;  %p511_p8 = scmp.ne.s32.totalorder %s751_s0, %s510_s19  ;;  %s22_s16 = int_to_ptr.vmem [resolvable:$true] %s21_s16 }
  0x16   :  { %p514_p9 = scmp.lt.u32.totalorder %s510_s19, %s751_s0 }
  0x18   :  { %p516_p10 = pnand %p514_p9, %p511_p8 }
  0x1a   :  { %519 = shalt.err (!%p516_p10)
}
  0x1b   :  { %s520_s24 = scalar_lea.vmem %s22_s16, 256  ;;  %p525_p12 = scmp.lt.s32.totalorder %s22_s16, %s22_s16 }
  0x1c   :  { %p521_p11 = scmp.ne.s32.totalorder %s22_s16, %s520_s24  ;;  %p526_p13 = scmp.lt.s32.totalorder %s520_s24, %s520_s24 }
  0x1e   :  { %p527_p0 = por %p526_p13, %p525_p12 }
  0x20   :  { %p528_p1 = pnand %p527_p0, %p521_p11 }
  0x22   :  { %531 = shalt.err (!%p528_p1)
}
  0x23   :  { %s610_s1 = smov 128   ;;  %s611_s25 = smov 8  }
  0x24   :  { %27 = dma.hbm_to_vmem [thread:$0]  %s751_s0, 256, %s22_s16, [#allocation4], %s610_s1, %s610_s1, %s611_s25  }
  0x25   :  { %s612_s28 = smov [#allocation8]   ;;  %s613_s30 = smov [#allocation9]  }
  0x26   :  { %s45_s29 = sshll.u32 %s612_s28, 4  ;;  %s61_s8 = sshll.u32 %s613_s30, 4  ;;  %s46_s29 = int_to_ptr.vmem [resolvable:$true] %s45_s29  ;;  %s687_s8 = int_to_ptr.vmem [resolvable:$true] %s61_s8 }
  0x27   :  { %s532_s13 = scalar_lea.hbm %s753_s2, 256 }
  0x28   :  { %p533_p2 = scmp.ne.s32.totalorder %s753_s2, %s532_s13  ;;  %p536_p3 = scmp.lt.u32.totalorder %s532_s13, %s753_s2 }
  0x2a   :  { %p538_p4 = pnand %p536_p3, %p533_p2 }
  0x2c   :  { %541 = shalt.err (!%p538_p4)
}
  0x2d   :  { %s542_s0 = scalar_lea.vmem %s46_s29, 256  ;;  %p547_p6 = scmp.lt.s32.totalorder %s46_s29, %s46_s29 }
  0x2e   :  { %p543_p5 = scmp.ne.s32.totalorder %s46_s29, %s542_s0  ;;  %p548_p7 = scmp.lt.s32.totalorder %s542_s0, %s542_s0 }
  0x30   :  { %p549_p8 = por %p548_p7, %p547_p6 }
  0x32   :  { %p550_p9 = pnand %p549_p8, %p543_p5 }
  0x34   :  { %553 = shalt.err (!%p550_p9)
}
  0x35   :  { %51 = dma.hbm_to_vmem [thread:$0]  %s753_s2, 256, %s46_s29, [#allocation7], %s607_s11, %s607_s11, %s608_s12  }
  0x36   :  { %s554_s22 = scalar_lea.hbm %s756_s5, 1024 }
  0x37   :  { %p555_p10 = scmp.ne.s32.totalorder %s756_s5, %s554_s22  ;;  %p558_p11 = scmp.lt.u32.totalorder %s554_s22, %s756_s5 }
  0x39   :  { %p560_p12 = pnand %p558_p11, %p555_p10 }
  0x3b   :  { %563 = shalt.err (!%p560_p12)
}
  0x3c   :  { %s564_s28 = scalar_lea.vmem %s687_s8, 1024  ;;  %p569_p0 = scmp.lt.s32.totalorder %s687_s8, %s687_s8 }
  0x3d   :  { %p565_p13 = scmp.ne.s32.totalorder %s687_s8, %s564_s28  ;;  %p570_p1 = scmp.lt.s32.totalorder %s564_s28, %s564_s28 }
  0x3f   :  { %p571_p2 = por %p570_p1, %p569_p0 }
  0x41   :  { %p572_p3 = pnand %p571_p2, %p565_p13 }
  0x43   :  { %575 = shalt.err (!%p572_p3)
}
  0x44   :  { %67 = dma.hbm_to_vmem [thread:$0]  %s756_s5, 1024, %s687_s8, [#allocation10], %s607_s11, %s607_s11, %s608_s12  }
  0x45   :  { %598 = dma.done.wait [#allocation4], 256  }
  0x46   :  { %599 = vsyncadd [#allocation4], 4294967040 }
  0x47   :  { %600 = dma.done.wait [#allocation7], 512  }
  0x48   :  { %601 = vsyncadd [#allocation7], 4294966784 }
  0x49   :  { %602 = dma.done.wait [#allocation10], 1024  }
  0x4a   :  { %603 = vsyncadd [#allocation10], 4294966272  ;;  %v614_v0 = vmov 0.0   ;;  %vm615_vm0 = vmmov 0   ;;  %v468_v1 = vld [vmem:[#allocation6] sm:$0xff]   ;;  %v469_v2 = vld [vmem:[#allocation6 + $0x8] sm:$0xff]  }
  0x4b   :  { %421 = vmatprep.subr.bf16.mxu1 %v614_v0  ;;  %425 = vmatprep.mubr.msk.bf16.mxu1 %vm615_vm0, %v614_v0  ;;  %v89_v3 = vld [vmem:[#allocation3] sm:$0xff]  ;;  %v90_v4 = vld [vmem:[#allocation3 + $0x8] sm:$0xff]  ;;  %vm115_vm1 = vcmask 261120   ;;  %v472_v8 = vld [vmem:[#allocation9] sm:$0xff]   ;;  %s616_s9 = smov [#allocation11]  }
  0x4c   :  { %437 = vmatprep.subr.bf16.mxu0 %v614_v0  ;;  %453 = vmatprep.mubr.msk.bf16.mxu0 %vm615_vm0, %v614_v0  ;;  %v470_v5 = vld [vmem:[#allocation8] sm:$0xff]   ;;  %v91_v6 = vpack.c.bf16 %v90_v4, %v89_v3  ;;  %v471_v7 = vld [vmem:[#allocation8 + $0x8] sm:$0xff]   ;;  %v473_v9 = vld [vmem:[#allocation9 + $0x8] sm:$0xff]   ;;  %s373_s10 = sshll.u32 %s616_s9, 4  ;;  %s374_s10 = int_to_ptr.vmem [resolvable:$true] %s373_s10 }
  0x4d   :  { %422 = vmatpush3.bf16.msra.mxu1 %v468_v1  ;;  %438 = vmatpush3.bf16.msra.mxu0 %v472_v8  ;;  %v474_v10 = vld [vmem:[#allocation9 + $0x10] sm:$0xff]   ;;  %v475_v11 = vld [vmem:[#allocation9 + $0x18] sm:$0xff]   ;;  %v476_v12 = vld [vmem:[#allocation9 + $0x20] sm:$0xff]   ;;  %p581_p5 = scmp.lt.s32.totalorder %s374_s10, %s374_s10 }
  0x4e   :  { %423 = vmatprep.subr.bf16.mxu1 %v614_v0  ;;  %439 = vmatprep.subr.bf16.mxu0 %v614_v0  ;;  %v477_v13 = vld [vmem:[#allocation9 + $0x28] sm:$0xff]   ;;  %v478_v14 = vld [vmem:[#allocation9 + $0x30] sm:$0xff]   ;;  %v479_v15 = vld [vmem:[#allocation9 + $0x38] sm:$0xff]  }
  0x4f   :  { %v391_v20 = vld [vmem:[%s755_s4] ss:$0 sm:$0xff] }
  0x50   :  { %v387_v33 = vld [vmem:[%s754_s3] ss:$0 sm:$0xff]  ;;  %s576_s3 = scalar_lea.vmem %s374_s10, 256 }
  0x51   :  { %424 = vmatpush3.bf16.msra.mxu1 %v469_v2  ;;  %440 = vmatpush3.bf16.msra.mxu0 %v473_v9  ;;  %v405_v43 = vld [vmem:[%s757_s6] ss:$0 sm:$0xff]  ;;  %p577_p4 = scmp.ne.s32.totalorder %s374_s10, %s576_s3  ;;  %p582_p6 = scmp.lt.s32.totalorder %s576_s3, %s576_s3 }
  0x52   :  { %429 = vmatprep.subr.bf16.mxu1 %v614_v0  ;;  %441 = vmatprep.subr.bf16.mxu0 %v614_v0 }
  0x53   :  { %p583_p7 = por %p582_p6, %p581_p5 }
  0x54   :  { %426 = vmatmul.mubr.msk.bf16.vlgmr.msra.gmra.mrb[0].mxu1 %vm115_vm1, %v91_v6 }
  0x55   :  { %430 = vmatpush3.bf16.msra.mxu1 %v470_v5  ;;  %433 = vmatprep.mubr.msk.bf16.mxu1 %vm615_vm0, %v614_v0  ;;  %p584_p8 = pnand %p583_p7, %p577_p4 }
  0x56   :  { %431 = vmatprep.subr.bf16.mxu1 %v614_v0  ;;  %442 = vmatpush3.bf16.msra.mxu0 %v474_v10 }
  0x57   :  { %443 = vmatprep.subr.bf16.mxu0 %v614_v0 }
  0x59   :  { %432 = vmatpush3.bf16.msra.mxu1 %v471_v7 }
  0x5a   :  { %444 = vmatpush3.bf16.msra.mxu0 %v475_v11 }
  0x5b   :  { %445 = vmatprep.subr.bf16.mxu0 %v614_v0 }
  0x5c   :  { %434 = vmatmul.mubr.msk.bf16.vlgmr.msra.gmra.mrb[4].mxu1 %vm115_vm1, %v91_v6 }
  0x5e   :  { %446 = vmatpush3.bf16.msra.mxu0 %v476_v12 }
  0x5f   :  { %447 = vmatprep.subr.bf16.mxu0 %v614_v0 }
  0x62   :  { %448 = vmatpush3.bf16.msra.mxu0 %v477_v13 }
  0x63   :  { %449 = vmatprep.subr.bf16.mxu0 %v614_v0 }
  0x66   :  { %450 = vmatpush3.bf16.msra.mxu0 %v478_v14 }
  0x67   :  { %451 = vmatprep.subr.bf16.mxu0 %v614_v0 }
  0x6a   :  { %452 = vmatpush3.bf16.msra.mxu0 %v479_v15 }
 0x127   :  { %v153_v16 = vpop.f32.mrb[0].mxu1 }
 0x128   :  { %v427_v17 = vpop.f32.mrb[1].mxu1  ;;  %v154_v35 = vadd.f32 %v387_v33, %v153_v16 }
 0x129   :  { %v156_v18 = vpop.f32.mrb[2].mxu1 }
 0x12a   :  { %v428_v19 = vpop.f32.mrb[3].mxu1  ;;  %v157_v38 = vadd.f32 %v387_v33, %v156_v18 }
 0x12f   :  { %v217_v21 = vpop.f32.mrb[4].mxu1 }
 0x130   :  { %v218_v22 = vadd.f32 %v391_v20, %v217_v21  ;;  %v435_v23 = vpop.f32.mrb[5].mxu1 }
 0x131   :  { %v220_v24 = vpop.f32.mrb[6].mxu1 }
 0x132   :  { %v395_v25 = vmul.f32 -1.442695, %v218_v22  ;;  %v221_v26 = vadd.f32 %v391_v20, %v220_v24  ;;  %v436_v27 = vpop.f32.mrb[7].mxu1 }
 0x134   :  { %480 = vpow2.f32 %v395_v25  ;;  %v396_v28 = vmul.f32 -1.442695, %v221_v26 }
 0x136   :  { %482 = vpow2.f32 %v396_v28 }
 0x13e   :  { %v481_v29 = vpop.eup %480 }
 0x13f   :  { %v230_v30 = vadd.f32 1.0, %v481_v29 }
 0x140   :  { %v483_v31 = vpop.eup %482 }
 0x141   :  { %484 = vrcp.f32 %v230_v30  ;;  %v231_v32 = vadd.f32 1.0, %v483_v31 }
 0x143   :  { %486 = vrcp.f32 %v231_v32 }
 0x14b   :  { %v485_v34 = vpop.eup %484 }
 0x14c   :  { %v236_v36 = vmul.f32 %v485_v34, %v218_v22 }
 0x14d   :  { %v487_v37 = vpop.eup %486 }
 0x14e   :  { %v238_v39 = vmul.f32 %v236_v36, %v154_v35  ;;  %v237_v40 = vmul.f32 %v487_v37, %v221_v26 }
 0x150   :  { %v239_v41 = vmul.f32 %v237_v40, %v157_v38 }
 0x152   :  { %v242_v42 = vpack.c.bf16 %v239_v41, %v238_v39 }
 0x154   :  { %454 = vmatmul.mubr.bf16.vlgmr.msra.gmra.mrb[0].mxu0 %v242_v42 }
 0x227   :  { %v341_v44 = vpop.f32.mrb[0].mxu0 }
 0x228   :  { %v364_v45 = vadd.f32 %v405_v43, %v341_v44  ;;  %v455_v46 = vpop.f32.mrb[1].mxu0 }
 0x229   :  { %v344_v47 = vpop.f32.mrb[2].mxu0 }
 0x22a   :  { %366 = vst [vmem:[#allocation11] sm:$0xff] %v364_v45  ;;  %v365_v48 = vadd.f32 %v405_v43, %v344_v47  ;;  %v456_v49 = vpop.f32.mrb[3].mxu0 }
 0x22c   :  { %367 = vst [vmem:[#allocation11 + $0x8] sm:$0xff] %v365_v48 }
 0x22d   :  { %587 = shalt.err (!%p584_p8)
}
 0x22e   :  { %s588_s14 = scalar_lea.hbm %s758_s7, 256 }
 0x22f   :  { %p589_p9 = scmp.ne.s32.totalorder %s758_s7, %s588_s14  ;;  %p592_p10 = scmp.lt.u32.totalorder %s588_s14, %s758_s7 }
 0x231   :  { %p594_p11 = pnand %p592_p10, %p589_p9 }
 0x233   :  { %597 = shalt.err (!%p594_p11)
}
 0x234   :  { %379 = dma.vmem_to_hbm [thread:$0]  %s374_s10, 256, %s758_s7, [#allocation5], %s610_s1, %s610_s1, %s611_s25  }
 0x235   :  { %604 = dma.done.wait [#allocation5], 256  }
 0x236   :  { %605 = vsyncadd [#allocation5], 4294967040 }
 0x237   :  { %383 = vsyncpa [#allocation4], 1 }
 0x238   :  { %384 = vsyncpa [#allocation7], 1 }
 0x239   :  { %385 = vsyncpa [#allocation10], 1 }
 0x23a   :  { %386 = vsyncpa [#allocation5], 1 }

</bundles_post_ra>
